<compile_context>
chip_gen: v7x
topology: tpu7x:2x2x1
jax: 0.10.0
libtpu: 0.0.40
codegen_flags: <defaults>
</compile_context>

<pallas_src>
import jax
import jax.numpy as jnp
from jax.experimental import pallas as pl
from jax.experimental.pallas import tpu as pltpu


def _pool_proj_kernel(x_ref, a_ref, w_ref, b_ref, o_ref):
    # x_ref: (c_tile, HW)    one sample's flattened channel tile
    # a_ref: (HW, PP)        adaptive-avg-pool matrix (resident, fetched once)
    # w_ref: (Cout, c_tile)  fused conv2@conv1 weight tile
    # b_ref: (Cout, 1)       fused bias (f32)
    # o_ref: (Cout, PP)      lane-dense output block for this sample
    ct = pl.program_id(1)

    pooled = jnp.dot(x_ref[...], a_ref[...], preferred_element_type=jnp.float32)
    contrib = jnp.dot(w_ref[...], pooled.astype(w_ref.dtype),
                      preferred_element_type=jnp.float32)

    @pl.when(ct == 0)
    def _init_with_bias():
        # bias add rides the VPU slot (broadcast (Cout,1) -> (Cout,PP))
        o_ref[...] = (contrib + b_ref[...]).astype(o_ref.dtype)

    @pl.when(ct > 0)
    def _accumulate():
        o_ref[...] += contrib.astype(o_ref.dtype)


def _adaptive_avg_matrix(in_size, out_size, dtype=jnp.float32):
    """M (in_size, out_size): column p averages the torch-AdaptiveAvgPool window p."""
    i = jnp.arange(in_size)[:, None]                       # (in, 1)
    p = jnp.arange(out_size)[None, :]                      # (1, out)
    start = (p * in_size) // out_size                      # floor(p*in/out)
    end = -((-(p + 1) * in_size) // out_size)              # ceil((p+1)*in/out)
    member = (i >= start) & (i < end)
    counts = (end - start).astype(dtype)
    return member.astype(dtype) / counts                   # (in, out)


def projection_head_convmlp(x, w1, b1, w2, b2, output_pooling_size=16,
                            compute_dtype=jnp.float32, max_c_tile=512):
    """x: (N, C, H, W) float32 NCHW.  Returns (N, proj_dim, P, P) float32."""
    N, C, H, W = x.shape
    P = int(output_pooling_size)
    PP = P * P
    HW = H * W

    # Accept PyTorch-style (out, in, 1, 1) conv weights as well as (out, in).
    w1 = w1.reshape(w1.shape[0], -1)
    w2 = w2.reshape(w2.shape[0], -1)
    Cout = w2.shape[0]

    # --- exact trace-time fusion of the two 1x1 convs (no nonlinearity between)
    w_fused = (w2 @ w1)                                    # (Cout, C)
    b_fused = (w2 @ b1 + b2).astype(jnp.float32).reshape(Cout, 1)

    # --- exact adaptive-average-pool matrix (separable -> Kronecker product)
    a_pool = jnp.kron(_adaptive_avg_matrix(H, P), _adaptive_avg_matrix(W, P))  # (HW, PP)

    # --- free metadata reshape only; x is read exactly once, by the kernel
    x_flat = x.reshape(N, C, HW)

    if compute_dtype != jnp.float32:
        x_flat = x_flat.astype(compute_dtype)
        a_pool = a_pool.astype(compute_dtype)
        w_fused = w_fused.astype(compute_dtype)
    else:
        w_fused = w_fused.astype(jnp.float32)

    # --- channel (reduction) tiling: trailing "arbitrary" grid axis
    if C <= max_c_tile:
        c_tile = C
    else:
        # TODO(synk): zero-pad C for non-divisible channel counts at scale.
        assert C % max_c_tile == 0, "C must be a multiple of max_c_tile when tiled"
        c_tile = max_c_tile
    num_ct = C // c_tile

    itemsize = jnp.dtype(compute_dtype).itemsize
    cost = pl.CostEstimate(
        flops=2 * N * C * HW * PP + 2 * N * Cout * C * PP,
        transcendentals=0,
        bytes_accessed=(N * C * HW * itemsize          # x (read once)
                        + HW * PP * itemsize           # pooling matrix (fetched once)
                        + Cout * C * itemsize + Cout * 4
                        + N * Cout * PP * 4),          # output
    )

    out = pl.pallas_call(
        _pool_proj_kernel,
        out_shape=jax.ShapeDtypeStruct((N, Cout, PP), jnp.float32),
        grid=(N, num_ct),
        in_specs=[
            pl.BlockSpec((None, c_tile, HW), lambda n, ct: (n, ct, 0)),
            pl.BlockSpec((HW, PP), lambda n, ct: (0, 0)),
            pl.BlockSpec((Cout, c_tile), lambda n, ct: (0, ct)),
            pl.BlockSpec((Cout, 1), lambda n, ct: (0, 0)),
        ],
        out_specs=pl.BlockSpec((None, Cout, PP), lambda n, ct: (n, 0, 0)),
        compiler_params=pltpu.CompilerParams(
            dimension_semantics=("parallel", "arbitrary")),
        cost_estimate=cost,
    )(x_flat, a_pool, w_fused, b_fused)

    # free metadata reshape back to NCHW
    return out.reshape(N, Cout, P, P)


def _init_conv_params(key, out_ch, in_ch):
    """Deterministic init mimicking PyTorch Conv2d default (kaiming-uniform bound)."""
    kw_, kb_ = jax.random.split(key)
    bound = 1.0 / jnp.sqrt(jnp.float32(in_ch))             # kernel_size = 1
    w = jax.random.uniform(kw_, (out_ch, in_ch), jnp.float32, -bound, bound)
    b = jax.random.uniform(kb_, (out_ch,), jnp.float32, -bound, bound)
    return w, b


if __name__ == "__main__":
    # Module defaults: dim_in=4, proj_dim=4, output_pooling_size=16, proj='convmlp'
    dim_in, proj_dim, P = 4, 4, 16
    N, H, W = 2, 32, 32                # 32x32 -> adaptive pool windows of 2x2 -> 16x16

    key = jax.random.PRNGKey(0)
    kx, k1, k2 = jax.random.split(key, 3)

    x = jax.random.normal(kx, (N, dim_in, H, W), jnp.float32)
    w1, b1 = _init_conv_params(k1, dim_in * 2, dim_in)     # Conv2d(dim_in, 2*dim_in, 1)
    w2, b2 = _init_conv_params(k2, proj_dim, dim_in * 2)   # Conv2d(2*dim_in, proj_dim, 1)

    out = projection_head_convmlp(x, w1, b1, w2, b2, output_pooling_size=P)
    out = jax.block_until_ready(out)

    # Pure-JAX reference (same math as the PyTorch module, un-fused).
    kh, kw_ = H // P, W // P
    pooled_ref = x.reshape(N, dim_in, P, kh, P, kw_).mean(axis=(3, 5))
    ref1 = jnp.einsum('oc,nchw->nohw', w1, pooled_ref) + b1[None, :, None, None]
    ref2 = jnp.einsum('oc,nchw->nohw', w2, ref1) + b2[None, :, None, None]

    assert out.shape == (N, proj_dim, P, P)
    assert jnp.allclose(out, ref2, rtol=1e-5, atol=1e-5)

    print("KERNEL_OK")
</pallas_src>

<mosaic_0001>
module attributes {stable_mosaic.version = 11 : i64} {
  func.func @_pool_proj_kernel(%arg0: i32, %arg1: i32, %arg2: memref<1x4x1024xf32, #tpu.memory_space<vmem>>, %arg3: memref<1024x256xf32, #tpu.memory_space<vmem>>, %arg4: memref<4x4xf32, #tpu.memory_space<vmem>>, %arg5: memref<4x1xf32, #tpu.memory_space<vmem>>, %arg6: memref<1x4x256xf32, #tpu.memory_space<vmem>>) attributes {dimension_semantics = [#tpu.dimension_semantics<parallel>, #tpu.dimension_semantics<arbitrary>], iteration_bounds = array<i64: 2, 1>, scalar_prefetch = 0 : i64, scratch_operands = 0 : i64, tpu.core_type = #tpu.core_type<tc>, window_params = [{transform_indices = @transform_0, window_bounds = array<i64: 1, 4, 1024>}, {pipeline_mode = #tpu.pipeline_mode<synchronous>, transform_indices = @transform_1, window_bounds = array<i64: 1024, 256>}, {transform_indices = @transform_2, window_bounds = array<i64: 4, 4>}, {pipeline_mode = #tpu.pipeline_mode<synchronous>, transform_indices = @transform_3, window_bounds = array<i64: 4, 1>}, {transform_indices = @transform_4, window_bounds = array<i64: 1, 4, 256>}]} {
    %c0 = arith.constant 0 : index
    %c0_0 = arith.constant 0 : index
    %c0_1 = arith.constant 0 : index
    %0 = vector.load %arg2[%c0, %c0_0, %c0_1] : memref<1x4x1024xf32, #tpu.memory_space<vmem>>, vector<1x4x1024xf32>
    %1 = vector.shape_cast %0 : vector<1x4x1024xf32> to vector<4x1024xf32>
    %c0_2 = arith.constant 0 : index
    %c0_3 = arith.constant 0 : index
    %2 = vector.load %arg3[%c0_2, %c0_3] : memref<1024x256xf32, #tpu.memory_space<vmem>>, vector<1024x256xf32>
    %cst = arith.constant dense<0.000000e+00> : vector<4x256xf32>
    %3 = tpu.matmul %1, %2, %cst {dimension_numbers = #tpu.dot_dimension_numbers<[1], [0], [0], [1], [0, 0, 1, 1], [], []>} : vector<4x1024xf32>, vector<1024x256xf32>, vector<4x256xf32> -> vector<4x256xf32>
    %c0_4 = arith.constant 0 : index
    %c0_5 = arith.constant 0 : index
    %4 = vector.load %arg4[%c0_4, %c0_5] : memref<4x4xf32, #tpu.memory_space<vmem>>, vector<4x4xf32>
    %cst_6 = arith.constant dense<0.000000e+00> : vector<4x256xf32>
    %5 = tpu.matmul %4, %3, %cst_6 {dimension_numbers = #tpu.dot_dimension_numbers<[1], [0], [0], [1], [0, 0, 1, 1], [], []>} : vector<4x4xf32>, vector<4x256xf32>, vector<4x256xf32> -> vector<4x256xf32>
    %c0_i32 = arith.constant 0 : i32
    %6 = arith.cmpi eq, %arg1, %c0_i32 : i32
    %7 = arith.extui %6 : i1 to i32
    %c0_i32_7 = arith.constant 0 : i32
    %8 = arith.cmpi ne, %7, %c0_i32_7 : i32
    scf.if %8 {
      %c0_10 = arith.constant 0 : index
      %c0_11 = arith.constant 0 : index
      %12 = vector.load %arg5[%c0_10, %c0_11] : memref<4x1xf32, #tpu.memory_space<vmem>>, vector<4x1xf32>
      %13 = vector.broadcast %12 : vector<4x1xf32> to vector<4x256xf32>
      %14 = arith.addf %5, %13 : vector<4x256xf32>
      %c0_12 = arith.constant 0 : index
      %c0_13 = arith.constant 0 : index
      %c0_14 = arith.constant 0 : index
      %15 = vector.load %arg6[%c0_12, %c0_13, %c0_14] : memref<1x4x256xf32, #tpu.memory_space<vmem>>, vector<1x4x256xf32>
      %16 = vector.shape_cast %15 : vector<1x4x256xf32> to vector<4x256xf32>
      %17 = vector.shape_cast %14 : vector<4x256xf32> to vector<1x4x256xf32>
      tpu.vector_store %arg6[%c0_12, %c0_13, %c0_14], %17 {strides = array<i32>} : memref<1x4x256xf32, #tpu.memory_space<vmem>>, vector<1x4x256xf32>,
    } else {
    }
    %c0_i32_8 = arith.constant 0 : i32
    %9 = arith.cmpi sgt, %arg1, %c0_i32_8 : i32
    %10 = arith.extui %9 : i1 to i32
    %c0_i32_9 = arith.constant 0 : i32
    %11 = arith.cmpi ne, %10, %c0_i32_9 : i32
    scf.if %11 {
      %c0_10 = arith.constant 0 : index
      %c0_11 = arith.constant 0 : index
      %c0_12 = arith.constant 0 : index
      %12 = vector.load %arg6[%c0_10, %c0_11, %c0_12] : memref<1x4x256xf32, #tpu.memory_space<vmem>>, vector<1x4x256xf32>
      %13 = vector.shape_cast %12 : vector<1x4x256xf32> to vector<4x256xf32>
      %14 = arith.addf %13, %5 : vector<4x256xf32>
      %c0_13 = arith.constant 0 : index
      %c0_14 = arith.constant 0 : index
      %c0_15 = arith.constant 0 : index
      %15 = vector.load %arg6[%c0_13, %c0_14, %c0_15] : memref<1x4x256xf32, #tpu.memory_space<vmem>>, vector<1x4x256xf32>
      %16 = vector.shape_cast %15 : vector<1x4x256xf32> to vector<4x256xf32>
      %17 = vector.shape_cast %14 : vector<4x256xf32> to vector<1x4x256xf32>
      tpu.vector_store %arg6[%c0_13, %c0_14, %c0_15], %17 {strides = array<i32>} : memref<1x4x256xf32, #tpu.memory_space<vmem>>, vector<1x4x256xf32>,
    } else {
    }
    return
  }
  func.func @transform_0(%arg0: i32, %arg1: i32) -> (i32, i32, i32) {
    %c0_i32 = arith.constant 0 : i32
    %c0_i32_0 = arith.constant 0 : i32
    return %arg0, %arg1, %c0_i32 : i32, i32, i32
  }
  func.func @transform_1(%arg0: i32, %arg1: i32) -> (i32, i32) {
    %c0_i32 = arith.constant 0 : i32
    %c0_i32_0 = arith.constant 0 : i32
    %c0_i32_1 = arith.constant 0 : i32
    return %c0_i32, %c0_i32_0 : i32, i32
  }
  func.func @transform_2(%arg0: i32, %arg1: i32) -> (i32, i32) {
    %c0_i32 = arith.constant 0 : i32
    %c0_i32_0 = arith.constant 0 : i32
    return %c0_i32, %arg1 : i32, i32
  }
  func.func @transform_3(%arg0: i32, %arg1: i32) -> (i32, i32) {
    %c0_i32 = arith.constant 0 : i32
    %c0_i32_0 = arith.constant 0 : i32
    %c0_i32_1 = arith.constant 0 : i32
    return %c0_i32, %c0_i32_0 : i32, i32
  }
  func.func @transform_4(%arg0: i32, %arg1: i32) -> (i32, i32, i32) {
    %c0_i32 = arith.constant 0 : i32
    %c0_i32_0 = arith.constant 0 : i32
    %c0_i32_1 = arith.constant 0 : i32
    return %arg0, %c0_i32, %c0_i32_0 : i32, i32, i32
  }
}

</mosaic_0001>

<bundles_post_ra>
// kernel: tpu_custom_call.1
= control target key start
LH: loop header
LB: loop body
LE: loop exit
PB: predicated region body
PF: predicated region fallthrough
CT: control target
= control target key end

     0   :  { %9 = vsyncpa [#allocation3], 0  ;;  %s1842_s0 = inlined_call_operand.hbm [shape: f32[2,4,1024], index: 0, kind: input, shape index: {}]   ;;  %s1843_s1 = inlined_call_operand.hbm [shape: f32[1024,256], index: 1, kind: input, shape index: {}]   ;;  %s1844_s2 = inlined_call_operand.vmem [shape: f32[4,4], index: 2, kind: input, shape index: {}]   ;;  %s1845_s3 = inlined_call_operand.vmem [shape: f32[4,1], index: 3, kind: input, shape index: {}]   ;;  %s1846_s4 = inlined_call_operand.hbm [shape: f32[2,4,256], index: 4, kind: output, shape index: {}]  }
   0x1   :  { %11 = vsyncpa [#allocation3 + $0x1], 0 }
   0x2   :  { %12 = vsyncpa [#allocation6], 0 }
   0x3   :  { %13 = vsyncpa [#allocation4], 0 }
   0x4   :  { %15 = vsyncpa [#allocation4 + $0x1], 0  ;;  %s1595_s15 = smov 0   ;;  %s1597_s16 = smov 0  }
   0x5   :  { %s1599_s17 = smov 0   ;;  %s1601_s18 = smov 0  }
   0x6   :  { %s1603_s19 = smov 0   ;;  %s1605_s20 = smov 0  }
   0x7 LB: > { %s1050_s21 = sadd.s32 4294967295, %s1561_s20   ;;  %s1051_s22 = sadd.s32 4294967294, %s1561_s20   ;;  %s1561_s20 = sphi %s1605_s20, %s21_s20   ;;  %s1557_s19 = sphi %s1603_s19, %s1870_s19   ;;  %s1553_s18 = sphi %s1601_s18, %s1869_s18   ;;  %s1549_s17 = sphi %s1599_s17, %s1868_s17   ;;  %s1545_s16 = sphi %s1597_s16, %s1867_s16   ;;  %s1541_s15 = sphi %s1595_s15, %s1866_s15  }
   0x8   : > { %p55_p0 = scmp.ne.s32.totalorder %s1545_s16, %s1541_s15  ;;  %p1629_p1 = scmp.eq.s32.totalorder %s1050_s21, 0 }
   0x9   : > { %p1633_p2 = scmp.eq.s32.totalorder %s1050_s21, 1  ;;  %p153_p3 = scmp.eq.s32.totalorder %s1051_s22, 1 }
   0xa   : > { %s1851_s23 = scalar_select %p1629_p1, 1, 0 }
   0xb   : > { %s1852_s24 = scalar_select %p1633_p2, 1, 0 }
   0xc   : > { %p1639_p4 = por %p1629_p1, %p55_p0  ;;  %p1052_p5 = scmp.ge.s32.totalorder %s1561_s20, 1 }
   0xd   : > { %p1644_p6 = por %p153_p3, %p55_p0  ;;  %p160_p7 = scmp.lt.s32.totalorder %s1561_s20, 3 }
   0xe   : > { %s1853_s25 = scalar_select %p1639_p4, 1, 0 }
   0xf   : > { %s1854_s26 = scalar_select %p1644_p6, 1, 0 }
  0x10   : > { %p1649_p8 = pnand %p1052_p5, %p160_p7  ;;  %s1563_s28 = smov [#allocation5]  }
  0x11   : > { %s172_s29 = sshll.u32 %s1563_s28, 4  ;;  %s33_s5 = sadd.s32 1, %s1557_s19  ;;  %s173_s29 = int_to_ptr.vmem [resolvable:$true] %s172_s29 }
  0x12   : > { %s1855_s27 = scalar_select %p1649_p8, 1, 0 }
  0x13   : > { %p1343_p9 = pneg %p1649_p8  ;;  %s1417_s8 = scalar_lea.hbm %s1843_s1, 32768 }
  0x14   : > { %p1418_p12 = scmp.ne.s32.totalorder %s1843_s1, %s1417_s8  ;;  %p1424_p5 = scmp.lt.u32.totalorder %s1417_s8, %s1843_s1 }
  0x15   : > { %p1658_p11 = pnand %p1343_p9, %p1629_p1 }
  0x17   : > { %p1419_p13 = pneg %p1658_p11 }
  0x19   : > { %p1420_p0 = pnand %p1419_p13, %p1418_p12 }
  0x1b   : > { %p1421_p3 = pneg %p1420_p0 }
  0x1d   : > { %p1426_p7 = pnand %p1424_p5, %p1421_p3 }
  0x1f   : > { %1429 = shalt.err (!%p1426_p7)
}
  0x20   : > { %s1430_s13 = scalar_lea.vmem %s173_s29, 32768  ;;  %p1438_p1 = scmp.lt.s32.totalorder %s173_s29, %s173_s29 }
  0x21   : > { %p1431_p9 = scmp.ne.s32.totalorder %s173_s29, %s1430_s13  ;;  %p1439_p4 = scmp.lt.s32.totalorder %s1430_s13, %s1430_s13 }
  0x23   : > { %p1433_p10 = pnand %p1431_p9, %p1419_p13  ;;  %p1440_p8 = por %p1439_p4, %p1438_p1 }
  0x25   : > { %p1434_p6 = pneg %p1433_p10 }
  0x27   : > { %p1441_p2 = pnand %p1440_p8, %p1434_p6 }
  0x29   : > { %1444 = shalt.err (!%p1441_p2)
}
  0x2a   : > { %s1564_s14 = smov 256   ;;  %s1565_s21 = smov 16  }
  0x2b   : > { %1346 = dma.hbm_to_vmem [thread:$0]  (!%p1658_p11), %s1843_s1, 32768, %s173_s29, [#allocation6], %s1564_s14, %s1564_s14, %s1565_s21  }
  0x2c   : > { %p35_p1 = scmp.ge.s32.totalorder %s33_s5, 2  ;;  %s42_s6 = sadd.s32 1, %s1549_s17 }
  0x2d   : > { %p49_p2 = scmp.ne.s32.totalorder %s1549_s17, %s1545_s16  ;;  %p50_p4 = scmp.eq.s32.totalorder %s1561_s20, 0 }
  0x2e   : > { %s1872_s5 = smov (%p35_p1, %s33_s5), 0  ;;  %p1858_p8 = scmp.ne.s32.totalorder %s1852_s24, 0 }
  0x2f   : > { %p1685_p6 = por %p50_p4, %p49_p2  ;;  %s37_s30 = ssub.s32 %s1557_s19, %s1872_s5 }
  0x30   : > { %p1691_p10 = por %p1858_p8, %p49_p2  ;;  %p1356_p12 = scmp.lt.s32.totalorder %s1561_s20, 2 }
  0x31   : > { %p40_p11 = scmp.eq.s32.totalorder %s37_s30, 0  ;;  %s196_s29 = sand.u32 1, %s1549_s17  }
  0x32   : > { %s1056_s9 = sshll.u32 %s196_s29, 5  ;;  %s1071_s11 = sshll.u32 %s1557_s19, 9 }
  0x33   : > { %s1700_s10 = scalar_select %p40_p11, %s1549_s17, %s42_s6  }
  0x34   : > { %s1706_s14 = scalar_lea.hbm %s1842_s0, %s1071_s11  ;;  %s200_s24 = scalar_lea.vmem [#allocation2], %s1056_s9 }
  0x35   : > { %s210_s21 = sshll.u32 %s200_s24, 4  ;;  %p1712_p13 = pnand %p1356_p12, %p1685_p6  ;;  %s1708_s21 = int_to_ptr.vmem [resolvable:$true] %s210_s21 }
  0x36   : > { %s197_s28 = scalar_lea.sflag [#allocation3], %s196_s29  ;;  %s1445_s6 = scalar_lea.hbm %s1706_s14, 512 }
  0x37   : > { %p1446_p0 = scmp.ne.s32.totalorder %s1706_s14, %s1445_s6  ;;  %p1447_p3 = pneg %p1712_p13 }
  0x38   : > { %s1450_s11 = scalar_lea.hbm %s1842_s0, 1024  ;;  %p1451_p9 = scmp.lt.u32.totalorder %s1706_s14, %s1842_s0 }
  0x39   : > { %p1448_p5 = pnand %p1447_p3, %p1446_p0  ;;  %p1452_p1 = scmp.lt.u32.totalorder %s1450_s11, %s1445_s6 }
  0x3a   : > { %p1454_p4 = scmp.lt.u32.totalorder %s1445_s6, %s1706_s14 }
  0x3b   : > { %p1449_p7 = pneg %p1448_p5  ;;  %p1453_p2 = por %p1452_p1, %p1451_p9 }
  0x3d   : > { %p1455_p6 = por %p1454_p4, %p1453_p2 }
  0x3f   : > { %p1456_p8 = pnand %p1455_p6, %p1449_p7 }
  0x41   : > { %1459 = shalt.err (!%p1456_p8)
}
  0x42   : > { %s1460_s29 = scalar_lea.vmem %s1708_s21, 512  ;;  %s1566_s13 = smov [#allocation2]  }
  0x43   : > { %p1461_p12 = scmp.ne.s32.totalorder %s1708_s21, %s1460_s29  ;;  %s1465_s24 = sshll.u32 %s1566_s13, 4  ;;  %s1466_s24 = int_to_ptr.vmem [resolvable:$false] %s1465_s24 }
  0x44   : > { %s1467_s30 = scalar_lea.vmem %s1466_s24, 1024  ;;  %p1468_p5 = scmp.lt.s32.totalorder %s1708_s21, %s1466_s24 }
  0x45   : > { %p1463_p11 = pnand %p1461_p12, %p1447_p3  ;;  %p1469_p9 = scmp.lt.s32.totalorder %s1467_s30, %s1460_s29 }
  0x47   : > { %p1464_p0 = pneg %p1463_p11  ;;  %p1470_p1 = por %p1469_p9, %p1468_p5 }
  0x49   : > { %p1471_p2 = pnand %p1470_p1, %p1464_p0 }
  0x4b   : > { %1474 = shalt.err (!%p1471_p2)
}
  0x4c   : > { %1350 = dma.hbm_to_vmem [thread:$0]  (!%p1712_p13), %s1706_s14, 512, %s1708_s21, %s197_s28  }
  0x4d   : > { %p1861_p7 = scmp.ne.s32.totalorder %s1855_s27, 0 }
  0x4e   : > { %s1744_s6 = sand.u32 (!%p1861_p7), 1, %s1545_s16   ;;  %p1862_p3 = scmp.ne.s32.totalorder (!%p1861_p7), %s1853_s25, 0 }
  0x4f   : > { %219 = sbr.rel (%p1861_p7) target bundleno = 671 (0x29f), region = 36  ;;  %s1060_s9 = sshll.u32 (!%p1861_p7), %s1744_s6, 5 }
  0x50   : > { %s222_s11 = scalar_lea.sflag (!%p1861_p7), [#allocation3], %s1744_s6  ;;  %s1748_s7 = scalar_lea.vmem (!%p1861_p7), [#allocation2], %s1060_s9 }
  0x56   : > { %1528 = dma.done.wait (%p1862_p3), %s222_s11, 512  }
  0x57   : > { %1530 = vsyncadd (%p1862_p3), %s222_s11, 4294966784  ;;  %p1863_p13 = scmp.ne.s32.totalorder %s1851_s23, 0 }
  0x59   : > { %1532 = dma.done.wait (%p1863_p13), [#allocation6], 32768  }
  0x5a   : > { %1534 = vsyncadd (%p1863_p13), [#allocation6], 4294934528  ;;  %v267_v0 = vld [vmem:[#allocation5 + $0x8] sm:$0xff]  ;;  %v269_v1 = vld [vmem:[#allocation5 + $0x18] sm:$0xff]  ;;  %vm823_vm0 = vcmask 1043456   ;;  %vm819_vm1 = vcmask 31744  }
  0x5b   : > { %v395_v2 = vld [vmem:[#allocation5 + $0x408] sm:$0xff]  ;;  %v1073_v3 = vpack.c.bf16 %v269_v1, %v267_v0  ;;  %v397_v4 = vld [vmem:[#allocation5 + $0x418] sm:$0xff]  ;;  %v266_v5 = vld [vmem:[#allocation5] sm:$0xff]  ;;  %s1062_s21 = sshll.u32 %s1744_s6, 3  ;;  %s1072_s22 = sshll.u32 %s1553_s18, 7 }
  0x5c   : > { %v268_v6 = vld [vmem:[#allocation5 + $0x10] sm:$0xff]  ;;  %v1201_v7 = vpack.c.bf16 %v397_v4, %v395_v2  ;;  %v394_v9 = vld [vmem:[#allocation5 + $0x400] sm:$0xff]  ;;  %v271_v11 = vld [vmem:[#allocation5 + $0x28] sm:$0xff]  ;;  %s257_s28 = scalar_lea.vmem [#allocation7], %s1062_s21  ;;  %s1793_s24 = scalar_lea.hbm %s1846_s4, %s1072_s22 }
  0x5d   : > { %v1075_v8 = vpack.c.bf16 %v268_v6, %v266_v5  ;;  %v396_v10 = vld [vmem:[#allocation5 + $0x410] sm:$0xff]  ;;  %1074 = vmatprep.subr.bf16.mxu1 %v1073_v3  ;;  %v273_v13 = vld [vmem:[#allocation5 + $0x38] sm:$0xff]  ;;  %v399_v14 = vld [vmem:[#allocation5 + $0x428] sm:$0xff]  ;;  %s944_s12 = sshll.u32 %s257_s28, 4  ;;  %s930_s30 = scalar_lea.sflag [#allocation4], %s1744_s6  ;;  %s1795_s12 = int_to_ptr.vmem [resolvable:$true] %s944_s12 }
  0x5e   : > { %v1203_v12 = vpack.c.bf16 %v396_v10, %v394_v9  ;;  %v401_v15 = vld [vmem:[#allocation5 + $0x438] sm:$0xff]  ;;  %1202 = vmatprep.subr.bf16.mxu0 %v1201_v7  ;;  %v1077_v16 = vpack.c.bf16 %v273_v13, %v271_v11  ;;  %v270_v18 = vld [vmem:[#allocation5 + $0x20] sm:$0xff]  ;;  %v272_v19 = vld [vmem:[#allocation5 + $0x30] sm:$0xff]  ;;  %s1475_s9 = scalar_lea.vmem %s1795_s12, 128  ;;  %s1569_s18 = smov [#allocation7]  }
  0x5f   : > { %1076 = vmatpush1.bf16.msra.mxu1 %v1075_v8  ;;  %v1205_v17 = vpack.c.bf16 %v401_v15, %v399_v14  ;;  %v398_v20 = vld [vmem:[#allocation5 + $0x420] sm:$0xff]  ;;  %v1079_v21 = vpack.c.bf16 %v272_v19, %v270_v18  ;;  %v400_v22 = vld [vmem:[#allocation5 + $0x430] sm:$0xff]  ;;  %v275_v23 = vld [vmem:[#allocation5 + $0x48] sm:$0xff]  ;;  %p1476_p4 = scmp.ne.s32.totalorder %s1795_s12, %s1475_s9  ;;  %s1479_s11 = sshll.u32 %s1569_s18, 4  ;;  %s1480_s11 = int_to_ptr.vmem [resolvable:$false] %s1479_s11 }
  0x60   : > { %1204 = vmatpush1.bf16.msra.mxu0 %v1203_v12  ;;  %v277_v24 = vld [vmem:[#allocation5 + $0x58] sm:$0xff]  ;;  %1078 = vmatprep.subr.bf16.mxu1 %v1077_v16  ;;  %v1207_v25 = vpack.c.bf16 %v400_v22, %v398_v20  ;;  %v403_v27 = vld [vmem:[#allocation5 + $0x448] sm:$0xff]  ;;  %v274_v29 = vld [vmem:[#allocation5 + $0x40] sm:$0xff]  ;;  %p1482_p12 = scmp.lt.s32.totalorder %s1795_s12, %s1480_s11 }
  0x61   : > { %1206 = vmatprep.subr.bf16.mxu0 %v1205_v17  ;;  %v1081_v26 = vpack.c.bf16 %v277_v24, %v275_v23  ;;  %v405_v28 = vld [vmem:[#allocation5 + $0x458] sm:$0xff]  ;;  %v276_v31 = vld [vmem:[#allocation5 + $0x50] sm:$0xff]  ;;  %v402_v32 = vld [vmem:[#allocation5 + $0x440] sm:$0xff]  ;;  %p1477_p6 = pnand %p1476_p4, %p1691_p10 }
  0x62   : > { %v1209_v30 = vpack.c.bf16 %v405_v28, %v403_v27  ;;  %v404_v33 = vld [vmem:[#allocation5 + $0x450] sm:$0xff]  ;;  %v1083_v34 = vpack.c.bf16 %v276_v31, %v274_v29  ;;  %v279_v35 = vld [vmem:[#allocation5 + $0x68] sm:$0xff]  ;;  %v281_v36 = vld [vmem:[#allocation5 + $0x78] sm:$0xff] }
  0x63   : > { %1080 = vmatpush1.bf16.msra.mxu1 %v1079_v21  ;;  %v407_v37 = vld [vmem:[#allocation5 + $0x468] sm:$0xff]  ;;  %v1211_v38 = vpack.c.bf16 %v404_v33, %v402_v32  ;;  %v1085_v39 = vpack.c.bf16 %v281_v36, %v279_v35  ;;  %v409_v40 = vld [vmem:[#allocation5 + $0x478] sm:$0xff]  ;;  %v278_v41 = vld [vmem:[#allocation5 + $0x60] sm:$0xff]  ;;  %p1478_p8 = pneg %p1477_p6 }
  0x64   : > { %1208 = vmatpush1.bf16.msra.mxu0 %v1207_v25  ;;  %1082 = vmatprep.subr.bf16.mxu1 %v1081_v26  ;;  %v280_v42 = vld [vmem:[#allocation5 + $0x70] sm:$0xff]  ;;  %v1213_v43 = vpack.c.bf16 %v409_v40, %v407_v37  ;;  %v406_v44 = vld [vmem:[#allocation5 + $0x460] sm:$0xff]  ;;  %v283_v46 = vld [vmem:[#allocation5 + $0x88] sm:$0xff] }
  0x65   : > { %1210 = vmatprep.subr.bf16.mxu0 %v1209_v30  ;;  %v408_v45 = vld [vmem:[#allocation5 + $0x470] sm:$0xff]  ;;  %v285_v47 = vld [vmem:[#allocation5 + $0x98] sm:$0xff]  ;;  %v411_v48 = vld [vmem:[#allocation5 + $0x488] sm:$0xff]  ;;  %v1087_v50 = vpack.c.bf16 %v280_v42, %v278_v41 }
  0x66   : > { %v413_v49 = vld [vmem:[#allocation5 + $0x498] sm:$0xff]  ;;  %v1215_v51 = vpack.c.bf16 %v408_v45, %v406_v44  ;;  %v1089_v52 = vpack.c.bf16 %v285_v47, %v283_v46  ;;  %v282_v53 = vld [vmem:[#allocation5 + $0x80] sm:$0xff]  ;;  %v284_v54 = vld [vmem:[#allocation5 + $0x90] sm:$0xff] }
  0x67   : > { %1084 = vmatpush1.bf16.msra.mxu1 %v1083_v34  ;;  %v410_v55 = vld [vmem:[#allocation5 + $0x480] sm:$0xff]  ;;  %v1217_v56 = vpack.c.bf16 %v413_v49, %v411_v48  ;;  %v412_v57 = vld [vmem:[#allocation5 + $0x490] sm:$0xff]  ;;  %v287_v58 = vld [vmem:[#allocation5 + $0xa8] sm:$0xff]  ;;  %v1091_v62 = vpack.c.bf16 %v284_v54, %v282_v53 }
  0x68   : > { %1212 = vmatpush1.bf16.msra.mxu0 %v1211_v38  ;;  %1086 = vmatprep.subr.bf16.mxu1 %v1085_v39  ;;  %v289_v59 = vld [vmem:[#allocation5 + $0xb8] sm:$0xff]  ;;  %v415_v60 = vld [vmem:[#allocation5 + $0x4a8] sm:$0xff]  ;;  %v1219_v63 = vpack.c.bf16 %v412_v57, %v410_v55  ;;  %v286_v1 = vld [vmem:[#allocation5 + $0xa0] sm:$0xff] }
  0x69   : > { %1214 = vmatprep.subr.bf16.mxu0 %v1213_v43  ;;  %v417_v61 = vld [vmem:[#allocation5 + $0x4b8] sm:$0xff]  ;;  %v1093_v0 = vpack.c.bf16 %v289_v59, %v287_v58  ;;  %v288_v2 = vld [vmem:[#allocation5 + $0xb0] sm:$0xff]  ;;  %v414_v3 = vld [vmem:[#allocation5 + $0x4a0] sm:$0xff] }
  0x6a   : > { %v1221_v4 = vpack.c.bf16 %v417_v61, %v415_v60  ;;  %v416_v5 = vld [vmem:[#allocation5 + $0x4b0] sm:$0xff]  ;;  %v291_v6 = vld [vmem:[#allocation5 + $0xc8] sm:$0xff]  ;;  %v293_v7 = vld [vmem:[#allocation5 + $0xd8] sm:$0xff]  ;;  %v1095_v10 = vpack.c.bf16 %v288_v2, %v286_v1 }
  0x6b   : > { %1088 = vmatpush1.bf16.msra.mxu1 %v1087_v50  ;;  %v419_v8 = vld [vmem:[#allocation5 + $0x4c8] sm:$0xff]  ;;  %v421_v9 = vld [vmem:[#allocation5 + $0x4d8] sm:$0xff]  ;;  %v1223_v11 = vpack.c.bf16 %v416_v5, %v414_v3  ;;  %v1097_v12 = vpack.c.bf16 %v293_v7, %v291_v6  ;;  %v290_v13 = vld [vmem:[#allocation5 + $0xc0] sm:$0xff] }
  0x6c   : > { %1216 = vmatpush1.bf16.msra.mxu0 %v1215_v51  ;;  %1090 = vmatprep.subr.bf16.mxu1 %v1089_v52  ;;  %v292_v14 = vld [vmem:[#allocation5 + $0xd0] sm:$0xff]  ;;  %v418_v15 = vld [vmem:[#allocation5 + $0x4c0] sm:$0xff]  ;;  %v1225_v16 = vpack.c.bf16 %v421_v9, %v419_v8  ;;  %v295_v18 = vld [vmem:[#allocation5 + $0xe8] sm:$0xff] }
  0x6d   : > { %1218 = vmatprep.subr.bf16.mxu0 %v1217_v56  ;;  %v420_v17 = vld [vmem:[#allocation5 + $0x4d0] sm:$0xff]  ;;  %v297_v19 = vld [vmem:[#allocation5 + $0xf8] sm:$0xff]  ;;  %v423_v20 = vld [vmem:[#allocation5 + $0x4e8] sm:$0xff]  ;;  %v1099_v22 = vpack.c.bf16 %v292_v14, %v290_v13 }
  0x6e   : > { %v425_v21 = vld [vmem:[#allocation5 + $0x4f8] sm:$0xff]  ;;  %v1227_v23 = vpack.c.bf16 %v420_v17, %v418_v15  ;;  %v1101_v24 = vpack.c.bf16 %v297_v19, %v295_v18  ;;  %v294_v25 = vld [vmem:[#allocation5 + $0xe0] sm:$0xff]  ;;  %v296_v26 = vld [vmem:[#allocation5 + $0xf0] sm:$0xff] }
  0x6f   : > { %1092 = vmatpush1.bf16.msra.mxu1 %v1091_v62  ;;  %v422_v27 = vld [vmem:[#allocation5 + $0x4e0] sm:$0xff]  ;;  %v1229_v28 = vpack.c.bf16 %v425_v21, %v423_v20  ;;  %v424_v29 = vld [vmem:[#allocation5 + $0x4f0] sm:$0xff]  ;;  %v299_v30 = vld [vmem:[#allocation5 + $0x108] sm:$0xff]  ;;  %v1103_v34 = vpack.c.bf16 %v296_v26, %v294_v25 }
  0x70   : > { %1220 = vmatpush1.bf16.msra.mxu0 %v1219_v63  ;;  %1094 = vmatprep.subr.bf16.mxu1 %v1093_v0  ;;  %v301_v31 = vld [vmem:[#allocation5 + $0x118] sm:$0xff]  ;;  %v427_v32 = vld [vmem:[#allocation5 + $0x508] sm:$0xff]  ;;  %v1231_v35 = vpack.c.bf16 %v424_v29, %v422_v27  ;;  %v298_v37 = vld [vmem:[#allocation5 + $0x100] sm:$0xff] }
  0x71   : > { %1222 = vmatprep.subr.bf16.mxu0 %v1221_v4  ;;  %v429_v33 = vld [vmem:[#allocation5 + $0x518] sm:$0xff]  ;;  %v1105_v36 = vpack.c.bf16 %v301_v31, %v299_v30  ;;  %v300_v38 = vld [vmem:[#allocation5 + $0x110] sm:$0xff]  ;;  %v426_v39 = vld [vmem:[#allocation5 + $0x500] sm:$0xff] }
  0x72   : > { %v1233_v40 = vpack.c.bf16 %v429_v33, %v427_v32  ;;  %v428_v41 = vld [vmem:[#allocation5 + $0x510] sm:$0xff]  ;;  %v303_v42 = vld [vmem:[#allocation5 + $0x128] sm:$0xff]  ;;  %v305_v43 = vld [vmem:[#allocation5 + $0x138] sm:$0xff]  ;;  %v1107_v46 = vpack.c.bf16 %v300_v38, %v298_v37 }
  0x73   : > { %1096 = vmatpush1.bf16.msra.mxu1 %v1095_v10  ;;  %v431_v44 = vld [vmem:[#allocation5 + $0x528] sm:$0xff]  ;;  %v433_v45 = vld [vmem:[#allocation5 + $0x538] sm:$0xff]  ;;  %v1235_v47 = vpack.c.bf16 %v428_v41, %v426_v39  ;;  %v1109_v48 = vpack.c.bf16 %v305_v43, %v303_v42  ;;  %v302_v49 = vld [vmem:[#allocation5 + $0x120] sm:$0xff] }
  0x74   : > { %1224 = vmatpush1.bf16.msra.mxu0 %v1223_v11  ;;  %1098 = vmatprep.subr.bf16.mxu1 %v1097_v12  ;;  %v304_v50 = vld [vmem:[#allocation5 + $0x130] sm:$0xff]  ;;  %v430_v51 = vld [vmem:[#allocation5 + $0x520] sm:$0xff]  ;;  %v1237_v52 = vpack.c.bf16 %v433_v45, %v431_v44  ;;  %v307_v54 = vld [vmem:[#allocation5 + $0x148] sm:$0xff] }
  0x75   : > { %1226 = vmatprep.subr.bf16.mxu0 %v1225_v16  ;;  %v432_v53 = vld [vmem:[#allocation5 + $0x530] sm:$0xff]  ;;  %v309_v55 = vld [vmem:[#allocation5 + $0x158] sm:$0xff]  ;;  %v435_v56 = vld [vmem:[#allocation5 + $0x548] sm:$0xff]  ;;  %v1111_v58 = vpack.c.bf16 %v304_v50, %v302_v49 }
  0x76   : > { %v437_v57 = vld [vmem:[#allocation5 + $0x558] sm:$0xff]  ;;  %v1239_v59 = vpack.c.bf16 %v432_v53, %v430_v51  ;;  %v1113_v60 = vpack.c.bf16 %v309_v55, %v307_v54  ;;  %v306_v61 = vld [vmem:[#allocation5 + $0x140] sm:$0xff]  ;;  %v308_v62 = vld [vmem:[#allocation5 + $0x150] sm:$0xff] }
  0x77   : > { %1100 = vmatpush1.bf16.msra.mxu1 %v1099_v22  ;;  %v434_v63 = vld [vmem:[#allocation5 + $0x540] sm:$0xff]  ;;  %v1241_v0 = vpack.c.bf16 %v437_v57, %v435_v56  ;;  %v436_v1 = vld [vmem:[#allocation5 + $0x550] sm:$0xff]  ;;  %v311_v2 = vld [vmem:[#allocation5 + $0x168] sm:$0xff]  ;;  %v1115_v6 = vpack.c.bf16 %v308_v62, %v306_v61 }
  0x78   : > { %1228 = vmatpush1.bf16.msra.mxu0 %v1227_v23  ;;  %1102 = vmatprep.subr.bf16.mxu1 %v1101_v24  ;;  %v313_v3 = vld [vmem:[#allocation5 + $0x178] sm:$0xff]  ;;  %v439_v4 = vld [vmem:[#allocation5 + $0x568] sm:$0xff]  ;;  %v310_v7 = vld [vmem:[#allocation5 + $0x160] sm:$0xff]  ;;  %v1243_v8 = vpack.c.bf16 %v436_v1, %v434_v63 }
  0x79   : > { %1230 = vmatprep.subr.bf16.mxu0 %v1229_v28  ;;  %v441_v5 = vld [vmem:[#allocation5 + $0x578] sm:$0xff]  ;;  %v1117_v9 = vpack.c.bf16 %v313_v3, %v311_v2  ;;  %v312_v10 = vld [vmem:[#allocation5 + $0x170] sm:$0xff]  ;;  %v438_v11 = vld [vmem:[#allocation5 + $0x560] sm:$0xff] }
  0x7a   : > { %v440_v12 = vld [vmem:[#allocation5 + $0x570] sm:$0xff]  ;;  %v1245_v13 = vpack.c.bf16 %v441_v5, %v439_v4  ;;  %v315_v14 = vld [vmem:[#allocation5 + $0x188] sm:$0xff]  ;;  %v317_v15 = vld [vmem:[#allocation5 + $0x198] sm:$0xff]  ;;  %v1119_v21 = vpack.c.bf16 %v312_v10, %v310_v7 }
  0x7b   : > { %1104 = vmatpush1.bf16.msra.mxu1 %v1103_v34  ;;  %v1759_v16 = vld [vmem:[%s1748_s7] sm:$0xff]  ;;  %v443_v17 = vld [vmem:[#allocation5 + $0x588] sm:$0xff]  ;;  %v445_v18 = vld [vmem:[#allocation5 + $0x598] sm:$0xff]  ;;  %v1247_v23 = vpack.c.bf16 %v440_v12, %v438_v11  ;;  %v1121_v24 = vpack.c.bf16 %v317_v15, %v315_v14 }
  0x7c   : > { %1232 = vmatpush1.bf16.msra.mxu0 %v1231_v35  ;;  %1106 = vmatprep.subr.bf16.mxu1 %v1105_v36  ;;  %v526_v19 = vcombine.high %v1759_v16, %v1759_v16  ;;  %v1764_v20 = vld [vmem:[%s1748_s7 + $0x10] sm:$0xff]  ;;  %v314_v25 = vld [vmem:[#allocation5 + $0x180] sm:$0xff]  ;;  %v1249_v28 = vpack.c.bf16 %v445_v18, %v443_v17  ;;  %v319_v30 = vld [vmem:[#allocation5 + $0x1a8] sm:$0xff] }
  0x7d   : > { %1234 = vmatprep.subr.bf16.mxu0 %v1233_v40  ;;  %v528_v22 = vcombine.high %v1764_v20, %v1764_v20  ;;  %v316_v26 = vld [vmem:[#allocation5 + $0x190] sm:$0xff]  ;;  %v442_v27 = vld [vmem:[#allocation5 + $0x580] sm:$0xff]  ;;  %v321_v31 = vld [vmem:[#allocation5 + $0x1b8] sm:$0xff] }
  0x7e   : > { %v444_v29 = vld [vmem:[#allocation5 + $0x590] sm:$0xff]  ;;  %598 = vmatprep.mubr.f32.mxu1 %v526_v19  ;;  %v447_v32 = vld [vmem:[#allocation5 + $0x5a8] sm:$0xff]  ;;  %v449_v33 = vld [vmem:[#allocation5 + $0x5b8] sm:$0xff]  ;;  %v1123_v34 = vpack.c.bf16 %v316_v26, %v314_v25  ;;  %v1125_v36 = vpack.c.bf16 %v321_v31, %v319_v30 }
  0x7f   : > { %1108 = vmatpush1.bf16.msra.mxu1 %v1107_v46  ;;  %740 = vmatprep.mubr.f32.mxu0 %v528_v22  ;;  %v1251_v35 = vpack.c.bf16 %v444_v29, %v442_v27  ;;  %v318_v37 = vld [vmem:[#allocation5 + $0x1a0] sm:$0xff]  ;;  %v320_v38 = vld [vmem:[#allocation5 + $0x1b0] sm:$0xff]  ;;  %v1253_v40 = vpack.c.bf16 %v449_v33, %v447_v32  ;;  %v323_v42 = vld [vmem:[#allocation5 + $0x1c8] sm:$0xff] }
  0x80   : > { %1236 = vmatpush1.bf16.msra.mxu0 %v1235_v47  ;;  %1110 = vmatprep.subr.bf16.mxu1 %v1109_v48  ;;  %v446_v39 = vld [vmem:[#allocation5 + $0x5a0] sm:$0xff]  ;;  %v448_v41 = vld [vmem:[#allocation5 + $0x5b0] sm:$0xff]  ;;  %v325_v43 = vld [vmem:[#allocation5 + $0x1d8] sm:$0xff]  ;;  %v1127_v46 = vpack.c.bf16 %v320_v38, %v318_v37 }
  0x81   : > { %1238 = vmatprep.subr.bf16.mxu0 %v1237_v52  ;;  %v451_v44 = vld [vmem:[#allocation5 + $0x5c8] sm:$0xff]  ;;  %v453_v45 = vld [vmem:[#allocation5 + $0x5d8] sm:$0xff]  ;;  %v1255_v47 = vpack.c.bf16 %v448_v41, %v446_v39  ;;  %v1129_v48 = vpack.c.bf16 %v325_v43, %v323_v42  ;;  %v322_v49 = vld [vmem:[#allocation5 + $0x1c0] sm:$0xff] }
  0x82   : > { %v324_v50 = vld [vmem:[#allocation5 + $0x1d0] sm:$0xff]  ;;  %v450_v51 = vld [vmem:[#allocation5 + $0x5c0] sm:$0xff]  ;;  %v1257_v52 = vpack.c.bf16 %v453_v45, %v451_v44  ;;  %v327_v54 = vld [vmem:[#allocation5 + $0x1e8] sm:$0xff] }
  0x83   : > { %1112 = vmatpush1.bf16.msra.mxu1 %v1111_v58  ;;  %v452_v53 = vld [vmem:[#allocation5 + $0x5d0] sm:$0xff]  ;;  %v329_v55 = vld [vmem:[#allocation5 + $0x1f8] sm:$0xff]  ;;  %v455_v56 = vld [vmem:[#allocation5 + $0x5e8] sm:$0xff]  ;;  %v1131_v58 = vpack.c.bf16 %v324_v50, %v322_v49 }
  0x84   : > { %1240 = vmatpush1.bf16.msra.mxu0 %v1239_v59  ;;  %1114 = vmatprep.subr.bf16.mxu1 %v1113_v60  ;;  %v457_v57 = vld [vmem:[#allocation5 + $0x5f8] sm:$0xff]  ;;  %v1259_v59 = vpack.c.bf16 %v452_v53, %v450_v51  ;;  %v1133_v60 = vpack.c.bf16 %v329_v55, %v327_v54  ;;  %v326_v61 = vld [vmem:[#allocation5 + $0x1e0] sm:$0xff]  ;;  %v328_v62 = vld [vmem:[#allocation5 + $0x1f0] sm:$0xff] }
  0x85   : > { %1242 = vmatprep.subr.bf16.mxu0 %v1241_v0  ;;  %v454_v63 = vld [vmem:[#allocation5 + $0x5e0] sm:$0xff]  ;;  %v1261_v0 = vpack.c.bf16 %v457_v57, %v455_v56  ;;  %v456_v1 = vld [vmem:[#allocation5 + $0x5f0] sm:$0xff]  ;;  %v331_v2 = vld [vmem:[#allocation5 + $0x208] sm:$0xff] }
  0x86   : > { %v333_v3 = vld [vmem:[#allocation5 + $0x218] sm:$0xff]  ;;  %v459_v4 = vld [vmem:[#allocation5 + $0x608] sm:$0xff]  ;;  %v1263_v7 = vpack.c.bf16 %v456_v1, %v454_v63  ;;  %v332_v10 = vld [vmem:[#allocation5 + $0x210] sm:$0xff] }
  0x87   : > { %1116 = vmatpush1.bf16.msra.mxu1 %v1115_v6  ;;  %v461_v5 = vld [vmem:[#allocation5 + $0x618] sm:$0xff]  ;;  %v1135_v6 = vpack.c.bf16 %v328_v62, %v326_v61  ;;  %v458_v11 = vld [vmem:[#allocation5 + $0x600] sm:$0xff]  ;;  %v335_v14 = vld [vmem:[#allocation5 + $0x228] sm:$0xff] }
  0x88   : > { %1244 = vmatpush1.bf16.msra.mxu0 %v1243_v8  ;;  %1118 = vmatprep.subr.bf16.mxu1 %v1117_v9  ;;  %v1137_v8 = vpack.c.bf16 %v333_v3, %v331_v2  ;;  %v330_v9 = vld [vmem:[#allocation5 + $0x200] sm:$0xff]  ;;  %v1265_v12 = vpack.c.bf16 %v461_v5, %v459_v4  ;;  %v337_v15 = vld [vmem:[#allocation5 + $0x238] sm:$0xff]  ;;  %v463_v17 = vld [vmem:[#allocation5 + $0x628] sm:$0xff] }
  0x89   : > { %1246 = vmatprep.subr.bf16.mxu0 %v1245_v13  ;;  %v460_v13 = vld [vmem:[#allocation5 + $0x610] sm:$0xff]  ;;  %v465_v18 = vld [vmem:[#allocation5 + $0x638] sm:$0xff]  ;;  %v1139_v19 = vpack.c.bf16 %v332_v10, %v330_v9  ;;  %v1141_v22 = vpack.c.bf16 %v337_v15, %v335_v14  ;;  %v462_v25 = vld [vmem:[#allocation5 + $0x620] sm:$0xff] }
  0x8a   : > { %v1269_v26 = vpack.c.bf16 %v465_v18, %v463_v17  ;;  %v464_v27 = vld [vmem:[#allocation5 + $0x630] sm:$0xff]  ;;  %v341_v29 = vld [vmem:[#allocation5 + $0x258] sm:$0xff]  ;;  %v467_v30 = vld [vmem:[#allocation5 + $0x648] sm:$0xff] }
  0x8b   : > { %1120 = vmatpush1.bf16.msra.mxu1 %v1119_v21  ;;  %v1267_v21 = vpack.c.bf16 %v460_v13, %v458_v11  ;;  %v469_v31 = vld [vmem:[#allocation5 + $0x658] sm:$0xff]  ;;  %v1271_v33 = vpack.c.bf16 %v464_v27, %v462_v25  ;;  %v466_v37 = vld [vmem:[#allocation5 + $0x640] sm:$0xff]  ;;  %v468_v39 = vld [vmem:[#allocation5 + $0x650] sm:$0xff] }
  0x8c   : > { %1248 = vmatpush1.bf16.msra.mxu0 %v1247_v23  ;;  %1122 = vmatprep.subr.bf16.mxu1 %v1121_v24  ;;  %v334_v23 = vld [vmem:[#allocation5 + $0x220] sm:$0xff]  ;;  %v336_v24 = vld [vmem:[#allocation5 + $0x230] sm:$0xff]  ;;  %v1273_v38 = vpack.c.bf16 %v469_v31, %v467_v30  ;;  %v345_v41 = vld [vmem:[#allocation5 + $0x278] sm:$0xff] }
  0x8d   : > { %1250 = vmatprep.subr.bf16.mxu0 %v1249_v28  ;;  %v339_v28 = vld [vmem:[#allocation5 + $0x248] sm:$0xff]  ;;  %v1143_v32 = vpack.c.bf16 %v336_v24, %v334_v23  ;;  %v342_v45 = vld [vmem:[#allocation5 + $0x260] sm:$0xff]  ;;  %v472_v49 = vld [vmem:[#allocation5 + $0x670] sm:$0xff] }
  0x8e   : > { %v471_v42 = vld [vmem:[#allocation5 + $0x668] sm:$0xff]  ;;  %v349_v51 = vld [vmem:[#allocation5 + $0x298] sm:$0xff]  ;;  %v346_v57 = vld [vmem:[#allocation5 + $0x280] sm:$0xff] }
  0x8f   : > { %1124 = vmatpush1.bf16.msra.mxu1 %v1123_v34  ;;  %v1145_v34 = vpack.c.bf16 %v341_v29, %v339_v28  ;;  %v347_v50 = vld [vmem:[#allocation5 + $0x288] sm:$0xff]  ;;  %v477_v53 = vld [vmem:[#allocation5 + $0x698] sm:$0xff]  ;;  %v476_v61 = vld [vmem:[#allocation5 + $0x690] sm:$0xff] }
  0x90   : > { %1252 = vmatpush1.bf16.msra.mxu0 %v1251_v35  ;;  %1126 = vmatprep.subr.bf16.mxu1 %v1125_v36  ;;  %v338_v35 = vld [vmem:[#allocation5 + $0x240] sm:$0xff]  ;;  %v340_v36 = vld [vmem:[#allocation5 + $0x250] sm:$0xff]  ;;  %v1153_v56 = vpack.c.bf16 %v349_v51, %v347_v50  ;;  %v351_v62 = vld [vmem:[#allocation5 + $0x2a8] sm:$0xff] }
  0x91   : > { %1254 = vmatprep.subr.bf16.mxu0 %v1253_v40  ;;  %v343_v40 = vld [vmem:[#allocation5 + $0x268] sm:$0xff]  ;;  %v1147_v43 = vpack.c.bf16 %v340_v36, %v338_v35  ;;  %v353_v63 = vld [vmem:[#allocation5 + $0x2b8] sm:$0xff]  ;;  %v350_v5 = vld [vmem:[#allocation5 + $0x2a0] sm:$0xff] }
  0x92   : > { %v1149_v44 = vpack.c.bf16 %v345_v41, %v343_v40  ;;  %v481_v1 = vld [vmem:[#allocation5 + $0x6b8] sm:$0xff]  ;;  %v1157_v4 = vpack.c.bf16 %v353_v63, %v351_v62  ;;  %v480_v9 = vld [vmem:[#allocation5 + $0x6b0] sm:$0xff]  ;;  %v355_v10 = vld [vmem:[#allocation5 + $0x2c8] sm:$0xff] }
  0x93   : > { %1128 = vmatpush1.bf16.msra.mxu1 %v1127_v46  ;;  %v344_v46 = vld [vmem:[#allocation5 + $0x270] sm:$0xff]  ;;  %v357_v11 = vld [vmem:[#allocation5 + $0x2d8] sm:$0xff]  ;;  %v354_v15 = vld [vmem:[#allocation5 + $0x2c0] sm:$0xff] }
  0x94   : > { %1256 = vmatpush1.bf16.msra.mxu0 %v1255_v47  ;;  %1130 = vmatprep.subr.bf16.mxu1 %v1129_v48  ;;  %v470_v47 = vld [vmem:[#allocation5 + $0x660] sm:$0xff]  ;;  %v1151_v54 = vpack.c.bf16 %v344_v46, %v342_v45  ;;  %v485_v13 = vld [vmem:[#allocation5 + $0x6d8] sm:$0xff]  ;;  %v356_v17 = vld [vmem:[#allocation5 + $0x2d0] sm:$0xff] }
  0x95   : > { %1258 = vmatprep.subr.bf16.mxu0 %v1257_v52  ;;  %v475_v52 = vld [vmem:[#allocation5 + $0x688] sm:$0xff]  ;;  %v1279_v55 = vpack.c.bf16 %v472_v49, %v470_v47  ;;  %v361_v25 = vld [vmem:[#allocation5 + $0x2f8] sm:$0xff]  ;;  %v358_v35 = vld [vmem:[#allocation5 + $0x2e0] sm:$0xff] }
  0x96   : > { %v359_v23 = vld [vmem:[#allocation5 + $0x2e8] sm:$0xff]  ;;  %v1774_v27 = vld [vmem:[%s1748_s7 + $0x18] sm:$0xff]  ;;  %v360_v36 = vld [vmem:[#allocation5 + $0x2f0] sm:$0xff] }
  0x97   : > { %1132 = vmatpush1.bf16.msra.mxu1 %v1131_v58  ;;  %v348_v58 = vld [vmem:[#allocation5 + $0x290] sm:$0xff]  ;;  %v487_v28 = vld [vmem:[#allocation5 + $0x6e8] sm:$0xff]  ;;  %v489_v29 = vld [vmem:[#allocation5 + $0x6f8] sm:$0xff]  ;;  %v529_v31 = vcombine.high %v1774_v27, %v1774_v27 }
  0x98   : > { %1260 = vmatpush1.bf16.msra.mxu0 %v1259_v59  ;;  %1134 = vmatprep.subr.bf16.mxu1 %v1133_v60  ;;  %v474_v59 = vld [vmem:[#allocation5 + $0x680] sm:$0xff]  ;;  %v1281_v60 = vpack.c.bf16 %v477_v53, %v475_v52  ;;  %v1155_v2 = vpack.c.bf16 %v348_v58, %v346_v57  ;;  %v363_v40 = vld [vmem:[#allocation5 + $0x308] sm:$0xff]  ;;  %v365_v41 = vld [vmem:[#allocation5 + $0x318] sm:$0xff] }
  0x99   : > { %1262 = vmatprep.subr.bf16.mxu0 %v1261_v0  ;;  %v479_v0 = vld [vmem:[#allocation5 + $0x6a8] sm:$0xff]  ;;  %v1283_v3 = vpack.c.bf16 %v476_v61, %v474_v59  ;;  %v362_v45 = vld [vmem:[#allocation5 + $0x300] sm:$0xff]  ;;  %v364_v46 = vld [vmem:[#allocation5 + $0x310] sm:$0xff] }
  0x9a   : > { %v490_v47 = vld [vmem:[#allocation5 + $0x700] sm:$0xff]  ;;  %v492_v49 = vld [vmem:[#allocation5 + $0x710] sm:$0xff]  ;;  %v367_v50 = vld [vmem:[#allocation5 + $0x328] sm:$0xff] }
  0x9b   : > { %1136 = vmatpush1.bf16.msra.mxu1 %v1135_v6  ;;  %v352_v6 = vld [vmem:[#allocation5 + $0x2b0] sm:$0xff]  ;;  %v369_v51 = vld [vmem:[#allocation5 + $0x338] sm:$0xff]  ;;  %v495_v52 = vld [vmem:[#allocation5 + $0x728] sm:$0xff] }
  0x9c   : > { %1264 = vmatpush1.bf16.msra.mxu0 %v1263_v7  ;;  %1138 = vmatprep.subr.bf16.mxu1 %v1137_v8  ;;  %v478_v7 = vld [vmem:[#allocation5 + $0x6a0] sm:$0xff]  ;;  %v1285_v8 = vpack.c.bf16 %v481_v1, %v479_v0  ;;  %v1159_v14 = vpack.c.bf16 %v352_v6, %v350_v5  ;;  %v497_v53 = vld [vmem:[#allocation5 + $0x738] sm:$0xff]  ;;  %v368_v58 = vld [vmem:[#allocation5 + $0x330] sm:$0xff] }
  0x9d   : > { %1266 = vmatprep.subr.bf16.mxu0 %v1265_v12  ;;  %v483_v12 = vld [vmem:[#allocation5 + $0x6c8] sm:$0xff]  ;;  %v1287_v18 = vpack.c.bf16 %v480_v9, %v478_v7  ;;  %v366_v57 = vld [vmem:[#allocation5 + $0x320] sm:$0xff]  ;;  %v496_v61 = vld [vmem:[#allocation5 + $0x730] sm:$0xff] }
  0x9e   : > { %599 = vmatmul.mubr.f32.vlgmr.msra.gmra.mrb[0].mxu1 %v1759_v16  ;;  %v473_v16 = vld [vmem:[#allocation5 + $0x678] sm:$0xff]  ;;  %v1289_v24 = vpack.c.bf16 %v485_v13, %v483_v12  ;;  %v494_v59 = vld [vmem:[#allocation5 + $0x720] sm:$0xff]  ;;  %v371_v62 = vld [vmem:[#allocation5 + $0x348] sm:$0xff] }
  0x9f   : > { %1140 = vmatpush1.bf16.msra.mxu1 %v1139_v19  ;;  %741 = vmatmul.mubr.f32.vlgmr.msra.gmra.mrb[0].mxu0 %v1764_v20  ;;  %v1275_v20 = vpack.c.bf16 %v468_v39, %v466_v37  ;;  %v1277_v48 = vpack.c.bf16 %v473_v16, %v471_v42  ;;  %v1161_v19 = vpack.c.bf16 %v357_v11, %v355_v10  ;;  %v486_v37 = vld [vmem:[#allocation5 + $0x6e0] sm:$0xff]  ;;  %v488_v39 = vld [vmem:[#allocation5 + $0x6f0] sm:$0xff]  ;;  %v491_v42 = vld [vmem:[#allocation5 + $0x708] sm:$0xff] }
  0xa0   : > { %1268 = vmatpush1.bf16.msra.mxu0 %v1267_v21  ;;  %1142 = vmatprep.subr.bf16.mxu1 %v1141_v22  ;;  %v482_v21 = vld [vmem:[#allocation5 + $0x6c0] sm:$0xff]  ;;  %v484_v22 = vld [vmem:[#allocation5 + $0x6d0] sm:$0xff]  ;;  %v493_v16 = vld [vmem:[#allocation5 + $0x718] sm:$0xff] }
  0xa1   : > { %1270 = vmatprep.subr.bf16.mxu0 %v1269_v26  ;;  %v1771_v26 = vld [vmem:[%s1748_s7 + $0x8] sm:$0xff]  ;;  %811 = vmatprep.mubr.f32.mxu0 %v529_v31  ;;  %v373_v63 = vld [vmem:[#allocation5 + $0x358] sm:$0xff]  ;;  %v370_v5 = vld [vmem:[#allocation5 + $0x340] sm:$0xff]  ;;  %s1481_s7 = scalar_lea.vmem %s1480_s11, 256 }
  0xa2   : > { %v527_v30 = vcombine.high %v1771_v26, %v1771_v26  ;;  %v499_v0 = vld [vmem:[#allocation5 + $0x748] sm:$0xff]  ;;  %v501_v1 = vld [vmem:[#allocation5 + $0x758] sm:$0xff]  ;;  %v372_v6 = vld [vmem:[#allocation5 + $0x350] sm:$0xff]  ;;  %p1483_p11 = scmp.lt.s32.totalorder %s1481_s7, %s1475_s9 }
  0xa3   : > { %1144 = vmatpush1.bf16.msra.mxu1 %v1143_v32  ;;  %v1163_v32 = vpack.c.bf16 %v356_v17, %v354_v15  ;;  %v498_v7 = vld [vmem:[#allocation5 + $0x740] sm:$0xff]  ;;  %v500_v9 = vld [vmem:[#allocation5 + $0x750] sm:$0xff]  ;;  %v375_v10 = vld [vmem:[#allocation5 + $0x368] sm:$0xff] }
  0xa4   : > { %1272 = vmatpush1.bf16.msra.mxu0 %v1271_v33  ;;  %1146 = vmatprep.subr.bf16.mxu1 %v1145_v34  ;;  %v1291_v33 = vpack.c.bf16 %v484_v22, %v482_v21  ;;  %v1165_v34 = vpack.c.bf16 %v361_v25, %v359_v23  ;;  %v377_v11 = vld [vmem:[#allocation5 + $0x378] sm:$0xff]  ;;  %v503_v12 = vld [vmem:[#allocation5 + $0x768] sm:$0xff]  ;;  %v1307_v15 = vpack.c.bf16 %v500_v9, %v498_v7  ;;  %v502_v21 = vld [vmem:[#allocation5 + $0x760] sm:$0xff]  ;;  %p1484_p0 = por %p1483_p11, %p1482_p12 }
  0xa5   : > { %1274 = vmatprep.subr.bf16.mxu0 %v1273_v38  ;;  %v1293_v38 = vpack.c.bf16 %v489_v29, %v487_v28  ;;  %669 = vmatprep.mubr.f32.mxu1 %v527_v30  ;;  %v505_v13 = vld [vmem:[#allocation5 + $0x778] sm:$0xff]  ;;  %v1181_v17 = vpack.c.bf16 %v377_v11, %v375_v10  ;;  %v504_v23 = vld [vmem:[#allocation5 + $0x770] sm:$0xff]  ;;  %v507_v28 = vld [vmem:[#allocation5 + $0x788] sm:$0xff]  ;;  %v1567_v10 = vmov 0.0  }
  0xa6   : > { %v1309_v22 = vpack.c.bf16 %v505_v13, %v503_v12  ;;  %v381_v25 = vld [vmem:[#allocation5 + $0x398] sm:$0xff]  ;;  %v1311_v31 = vpack.c.bf16 %v504_v23, %v502_v21  ;;  %v520_v7 = vld [vmem:[#allocation5 + $0x7f0] sm:$0xff]  ;;  %v905_v11 = vld [vmem:[%s1845_s3] sm:$0xf]  ;;  %v1568_v12 = vmov 0   ;;  %p1485_p5 = pnand %p1484_p0, %p1478_p8 }
  0xa7   : > { %1148 = vmatpush1.bf16.msra.mxu1 %v1147_v43  ;;  %v1167_v43 = vpack.c.bf16 %v360_v36, %v358_v35  ;;  %v509_v29 = vld [vmem:[#allocation5 + $0x798] sm:$0xff]  ;;  %v506_v35 = vld [vmem:[#allocation5 + $0x780] sm:$0xff]  ;;  %1412 = vset.pattern.permute.xlu0 %v1568_v12 }
  0xa8   : > { %1276 = vmatpush1.bf16.msra.mxu0 %v1275_v20  ;;  %1150 = vmatprep.subr.bf16.mxu1 %v1149_v44  ;;  %v1295_v20 = vpack.c.bf16 %v488_v39, %v486_v37  ;;  %v1169_v44 = vpack.c.bf16 %v365_v41, %v363_v40  ;;  %v1313_v36 = vpack.c.bf16 %v509_v29, %v507_v28  ;;  %v508_v37 = vld [vmem:[#allocation5 + $0x790] sm:$0xff]  ;;  %v385_v39 = vld [vmem:[#allocation5 + $0x3b8] sm:$0xff]  ;;  %v511_v40 = vld [vmem:[#allocation5 + $0x7a8] sm:$0xff] }
  0xa9   : > { %1278 = vmatprep.subr.bf16.mxu0 %v1277_v48  ;;  %v1297_v48 = vpack.c.bf16 %v493_v16, %v491_v42  ;;  %v513_v41 = vld [vmem:[#allocation5 + $0x7b8] sm:$0xff]  ;;  %v1315_v16 = vpack.c.bf16 %v508_v37, %v506_v35  ;;  %908 = vperm.xlu0 %1412, %v905_v11  }
  0xab   : > { %1152 = vmatpush1.bf16.msra.mxu1 %v1151_v54  ;;  %v1171_v54 = vpack.c.bf16 %v364_v46, %v362_v45  ;;  %v510_v45 = vld [vmem:[#allocation5 + $0x7a0] sm:$0xff]  ;;  %v1317_v46 = vpack.c.bf16 %v513_v41, %v511_v40 }
  0xac   : > { %1280 = vmatpush1.bf16.msra.mxu0 %v1279_v55  ;;  %1154 = vmatprep.subr.bf16.mxu1 %v1153_v56  ;;  %v1299_v55 = vpack.c.bf16 %v492_v49, %v490_v47  ;;  %v1173_v56 = vpack.c.bf16 %v369_v51, %v367_v50  ;;  %v512_v47 = vld [vmem:[#allocation5 + $0x7b0] sm:$0xff]  ;;  %v389_v49 = vld [vmem:[#allocation5 + $0x3d8] sm:$0xff]  ;;  %v515_v50 = vld [vmem:[#allocation5 + $0x7c8] sm:$0xff] }
  0xad   : > { %1282 = vmatprep.subr.bf16.mxu0 %v1281_v60  ;;  %v1301_v60 = vpack.c.bf16 %v497_v53, %v495_v52  ;;  %v517_v51 = vld [vmem:[#allocation5 + $0x7d8] sm:$0xff]  ;;  %v1319_v53 = vpack.c.bf16 %v512_v47, %v510_v45 }
  0xaf   : > { %1156 = vmatpush1.bf16.msra.mxu1 %v1155_v2  ;;  %v1175_v2 = vpack.c.bf16 %v368_v58, %v366_v57  ;;  %v514_v57 = vld [vmem:[#allocation5 + $0x7c0] sm:$0xff]  ;;  %v1321_v58 = vpack.c.bf16 %v517_v51, %v515_v50 }
  0xb0   : > { %1284 = vmatpush1.bf16.msra.mxu0 %v1283_v3  ;;  %1158 = vmatprep.subr.bf16.mxu1 %v1157_v4  ;;  %v1303_v3 = vpack.c.bf16 %v496_v61, %v494_v59  ;;  %v1177_v4 = vpack.c.bf16 %v373_v63, %v371_v62  ;;  %v516_v59 = vld [vmem:[#allocation5 + $0x7d0] sm:$0xff]  ;;  %v393_v61 = vld [vmem:[#allocation5 + $0x3f8] sm:$0xff]  ;;  %v519_v62 = vld [vmem:[#allocation5 + $0x7e8] sm:$0xff] }
  0xb1   : > { %1286 = vmatprep.subr.bf16.mxu0 %v1285_v8  ;;  %v1305_v8 = vpack.c.bf16 %v501_v1, %v499_v0  ;;  %v521_v63 = vld [vmem:[#allocation5 + $0x7f8] sm:$0xff]  ;;  %v1323_v1 = vpack.c.bf16 %v516_v59, %v514_v57 }
  0xb3   : > { %1160 = vmatpush1.bf16.msra.mxu1 %v1159_v14  ;;  %v1179_v14 = vpack.c.bf16 %v372_v6, %v370_v5  ;;  %v1325_v5 = vpack.c.bf16 %v521_v63, %v519_v62  ;;  %v518_v6 = vld [vmem:[#allocation5 + $0x7e0] sm:$0xff] }
  0xb4   : > { %1288 = vmatpush1.bf16.msra.mxu0 %v1287_v18  ;;  %1162 = vmatprep.subr.bf16.mxu1 %v1161_v19  ;;  %v374_v18 = vld [vmem:[#allocation5 + $0x360] sm:$0xff]  ;;  %v376_v19 = vld [vmem:[#allocation5 + $0x370] sm:$0xff]  ;;  %v1327_v9 = vpack.c.bf16 %v520_v7, %v518_v6 }
  0xb5   : > { %1290 = vmatprep.subr.bf16.mxu0 %v1289_v24  ;;  %v379_v24 = vld [vmem:[#allocation5 + $0x388] sm:$0xff]  ;;  %v1183_v30 = vpack.c.bf16 %v376_v19, %v374_v18 }
  0xb7   : > { %1164 = vmatpush1.bf16.msra.mxu1 %v1163_v32  ;;  %v1185_v32 = vpack.c.bf16 %v381_v25, %v379_v24 }
  0xb8   : > { %1292 = vmatpush1.bf16.msra.mxu0 %v1291_v33  ;;  %1166 = vmatprep.subr.bf16.mxu1 %v1165_v34  ;;  %v378_v33 = vld [vmem:[#allocation5 + $0x380] sm:$0xff]  ;;  %v380_v34 = vld [vmem:[#allocation5 + $0x390] sm:$0xff] }
  0xb9   : > { %1294 = vmatprep.subr.bf16.mxu0 %v1293_v38  ;;  %v383_v38 = vld [vmem:[#allocation5 + $0x3a8] sm:$0xff]  ;;  %v1187_v42 = vpack.c.bf16 %v380_v34, %v378_v33 }
  0xbb   : > { %1168 = vmatpush1.bf16.msra.mxu1 %v1167_v43  ;;  %v1189_v43 = vpack.c.bf16 %v385_v39, %v383_v38 }
  0xbc   : > { %1296 = vmatpush1.bf16.msra.mxu0 %v1295_v20  ;;  %1170 = vmatprep.subr.bf16.mxu1 %v1169_v44  ;;  %v382_v20 = vld [vmem:[#allocation5 + $0x3a0] sm:$0xff]  ;;  %v384_v44 = vld [vmem:[#allocation5 + $0x3b0] sm:$0xff] }
  0xbd   : > { %1298 = vmatprep.subr.bf16.mxu0 %v1297_v48  ;;  %v387_v48 = vld [vmem:[#allocation5 + $0x3c8] sm:$0xff]  ;;  %v1191_v52 = vpack.c.bf16 %v384_v44, %v382_v20 }
  0xbf   : > { %1172 = vmatpush1.bf16.msra.mxu1 %v1171_v54  ;;  %v1193_v54 = vpack.c.bf16 %v389_v49, %v387_v48 }
  0xc0   : > { %1300 = vmatpush1.bf16.msra.mxu0 %v1299_v55  ;;  %1174 = vmatprep.subr.bf16.mxu1 %v1173_v56  ;;  %v386_v55 = vld [vmem:[#allocation5 + $0x3c0] sm:$0xff]  ;;  %v388_v56 = vld [vmem:[#allocation5 + $0x3d0] sm:$0xff] }
  0xc1   : > { %1302 = vmatprep.subr.bf16.mxu0 %v1301_v60  ;;  %v391_v60 = vld [vmem:[#allocation5 + $0x3e8] sm:$0xff]  ;;  %v1195_v0 = vpack.c.bf16 %v388_v56, %v386_v55 }
  0xc3   : > { %1176 = vmatpush1.bf16.msra.mxu1 %v1175_v2  ;;  %v1197_v2 = vpack.c.bf16 %v393_v61, %v391_v60 }
  0xc4   : > { %1304 = vmatpush1.bf16.msra.mxu0 %v1303_v3  ;;  %1178 = vmatprep.subr.bf16.mxu1 %v1177_v4  ;;  %v390_v3 = vld [vmem:[#allocation5 + $0x3e0] sm:$0xff]  ;;  %v392_v4 = vld [vmem:[#allocation5 + $0x3f0] sm:$0xff] }
  0xc5   : > { %1306 = vmatprep.subr.bf16.mxu0 %v1305_v8  ;;  %v1199_v8 = vpack.c.bf16 %v392_v4, %v390_v3 }
  0xc7   : > { %1180 = vmatpush1.bf16.msra.mxu1 %v1179_v14 }
  0xc8   : > { %1308 = vmatpush1.bf16.msra.mxu0 %v1307_v15  ;;  %1182 = vmatprep.subr.bf16.mxu1 %v1181_v17 }
  0xc9   : > { %1310 = vmatprep.subr.bf16.mxu0 %v1309_v22 }
  0xcb   : > { %1184 = vmatpush1.bf16.msra.mxu1 %v1183_v30 }
  0xcc   : > { %1312 = vmatpush1.bf16.msra.mxu0 %v1311_v31  ;;  %1186 = vmatprep.subr.bf16.mxu1 %v1185_v32 }
  0xcd   : > { %1314 = vmatprep.subr.bf16.mxu0 %v1313_v36 }
  0xcf   : > { %1188 = vmatpush1.bf16.msra.mxu1 %v1187_v42 }
  0xd0   : > { %1316 = vmatpush1.bf16.msra.mxu0 %v1315_v16  ;;  %1190 = vmatprep.subr.bf16.mxu1 %v1189_v43 }
  0xd1   : > { %1318 = vmatprep.subr.bf16.mxu0 %v1317_v46 }
  0xd3   : > { %1192 = vmatpush1.bf16.msra.mxu1 %v1191_v52 }
  0xd4   : > { %1320 = vmatpush1.bf16.msra.mxu0 %v1319_v53  ;;  %1194 = vmatprep.subr.bf16.mxu1 %v1193_v54 }
  0xd5   : > { %1322 = vmatprep.subr.bf16.mxu0 %v1321_v58 }
  0xd7   : > { %1196 = vmatpush1.bf16.msra.mxu1 %v1195_v0 }
  0xd8   : > { %1324 = vmatpush1.bf16.msra.mxu0 %v1323_v1  ;;  %1198 = vmatprep.subr.bf16.mxu1 %v1197_v2 }
  0xd9   : > { %1326 = vmatprep.subr.bf16.mxu0 %v1325_v5 }
  0xdb   : > { %1200 = vmatpush1.bf16.msra.mxu1 %v1199_v8 }
  0xdc   : > { %1328 = vmatpush1.bf16.msra.mxu0 %v1327_v9 }
  0xde   : > { %670 = vmatmul.mubr.f32.vlgmr.msra.gmra.mrb[0].mxu1 %v1771_v26 }
  0xdf   : > { %812 = vmatmul.mubr.f32.vlgmr.msra.gmra.mrb[0].mxu0 %v1774_v27  ;;  %894 = vmatprep.mubr.f32.mxu1 %v1567_v10  ;;  %v818_v27 = vld [vmem:[%s1844_s2] sm:$0xf] }
 0x128   : > { %v909_v19 = vpop.permute.xlu0 %908 }
 0x1b1   : > { %v671_v13 = vpop.f32.mrb[0].mxu1 }
 0x1b2   : > { %v813_v14 = vpop.f32.mrb[0].mxu0  ;;  %v673_v15 = vpop.f32.mrb[1].mxu1 }
 0x1b3   : > { %v1329_v17 = vadd.f32 %v813_v14, %v671_v13  ;;  %v815_v18 = vpop.f32.mrb[1].mxu0 }
 0x1b4   : > { %v1330_v26 = vadd.f32 %v815_v18, %v673_v15 }
 0x1b6   : > { %1063 = vmatprep.subr.msk.mxu1 %vm823_vm0, %v1330_v26 }
 0x1b7   : > { %1064 = vmatpush1.msk.msra.mxu1 %vm823_vm0, %v1329_v17 }
 0x1b8   : > { %1065 = vmatmul.mubr.msk.f32.vlgmr.msra.gmra.mrb[2].mxu1 %vm819_vm1, %v818_v27 }
 0x28b   : > { %v896_v21 = vpop.f32.mrb[2].mxu1 }
 0x28c   : > { %v911_v22 = vadd.f32 %v909_v19, %v896_v21  ;;  %v898_v23 = vpop.f32.mrb[3].mxu1 }
 0x28d   : > { %v912_v24 = vadd.f32 %v909_v19, %v898_v23 }
 0x28f   : > { %v915_v25 = vcombine.low %v911_v22, %v912_v24 }
 0x291   : > { %917 = vst [vmem:[%s257_s28] sm:$0xff] %v915_v25 }
 0x292   : > { %1488 = shalt.err (!%p1485_p5)
}
 0x293   : > { %s1489_s6 = scalar_lea.hbm %s1793_s24, 128  ;;  %s1493_s27 = scalar_lea.hbm %s1846_s4, 256 }
 0x294   : > { %p1490_p9 = scmp.ne.s32.totalorder %s1793_s24, %s1489_s6  ;;  %p1494_p7 = scmp.lt.u32.totalorder %s1793_s24, %s1846_s4 }
 0x295   : > { %p1495_p3 = scmp.lt.u32.totalorder %s1493_s27, %s1489_s6  ;;  %p1497_p4 = scmp.lt.u32.totalorder %s1489_s6, %s1793_s24 }
 0x296   : > { %p1491_p1 = pnand %p1490_p9, %p1691_p10 }
 0x297   : > { %p1496_p13 = por %p1495_p3, %p1494_p7 }
 0x298   : > { %p1492_p2 = pneg %p1491_p1 }
 0x299   : > { %p1498_p6 = por %p1497_p4, %p1496_p13 }
 0x29b   : > { %p1499_p8 = pnand %p1498_p6, %p1492_p2 }
 0x29d   : > { %1502 = shalt.err (!%p1499_p8)
}
 0x29e   : > { %1341 = dma.vmem_to_hbm [thread:$0]  (%p1691_p10), %s1795_s12, 128, %s1793_s24, %s930_s30  }
 0x29f PF: > { %s956_s22 = sand.u32 1, %s1541_s15   ;;  %p1864_p12 = scmp.ne.s32.totalorder %s1854_s26, 0 }
 0x2a0   : > { %p1865_p11 = scmp.ge.s32.totalorder %s1561_s20, 2  ;;  %s957_s28 = scalar_lea.sflag [#allocation4], %s956_s22 }
 0x2a2   : > { %p1352_p0 = pnand %p1865_p11, %p1864_p12 }
 0x2a4   : > { %1536 = dma.done.wait (!%p1352_p0), %s957_s28, 128  }
 0x2a5   : > { %1538 = vsyncadd (!%p1352_p0), %s957_s28, 4294967168  ;;  %s21_s20 = sadd.s32 1, %s1561_s20   ;;  %s1866_s15 = smov %s1545_s16 }
 0x2a6   : > { %p18_p5 = scmp.ge.s32.totalorder %s21_s20, 4   ;;  %s1867_s16 = smov %s1549_s17 }
 0x2a7   : > { %s1868_s17 = smov %s1700_s10  ;;  %s1869_s18 = smov %s1557_s19 }
 0x2a8   : > { %s1870_s19 = smov %s1872_s5  ;;  %20 = sbr.rel (!%p18_p5) target bundleno = 7 (0x7), region = 96 }
 0x2af   :  { %962 = vsyncpa [#allocation3], 1 }
 0x2b0   :  { %964 = vsyncpa [#allocation3 + $0x1], 1 }
 0x2b1   :  { %965 = vsyncpa [#allocation6], 1 }
 0x2b2   :  { %966 = vsyncpa [#allocation4], 1 }
 0x2b3   :  { %968 = vsyncpa [#allocation4 + $0x1], 1 }

</bundles_post_ra>
